<compile_context>
chip_gen: v7x
topology: tpu7x:2x2x1
jax: 0.10.0
libtpu: 0.0.40
codegen_flags: <defaults>
</compile_context>

<pallas_src>
import functools
import math

import numpy as np
import jax
import jax.numpy as jnp
from jax.experimental import pallas as pl
from jax.experimental.pallas import tpu as pltpu


def _round_up(x, m):
    return (x + m - 1) // m * m


# ----------------------------------------------------------------------------
# Pallas GEMM kernels (bf16 MXU, f32 accumulate, fused bias / residual / ReLU)
# ----------------------------------------------------------------------------
def _gemm_kernel(x_ref, w_ref, b_ref, o_ref, acc_ref, *, relu):
    @pl.when(pl.program_id(2) == 0)
    def _():
        acc_ref[...] = jnp.zeros_like(acc_ref)

    acc_ref[...] += jnp.dot(x_ref[...], w_ref[...],
                            preferred_element_type=jnp.float32)

    @pl.when(pl.program_id(2) == pl.num_programs(2) - 1)
    def _():
        y = acc_ref[...] + b_ref[...]
        if relu:
            y = jnp.maximum(y, 0.0)
        o_ref[...] = y


def _gemm_res_kernel(x_ref, w_ref, b_ref, r_ref, o_ref, acc_ref, *, relu):
    @pl.when(pl.program_id(2) == 0)
    def _():
        acc_ref[...] = jnp.zeros_like(acc_ref)

    acc_ref[...] += jnp.dot(x_ref[...], w_ref[...],
                            preferred_element_type=jnp.float32)

    @pl.when(pl.program_id(2) == pl.num_programs(2) - 1)
    def _():
        y = acc_ref[...] + b_ref[...] + r_ref[...]
        if relu:
            y = jnp.maximum(y, 0.0)
        o_ref[...] = y


@functools.partial(jax.jit, static_argnames=("relu",))
def fused_matmul(x, w, shift, residual=None, *, relu=False):
    """(M,K) @ (Kp,Np) + shift[N] (+ residual), optional ReLU.

    `w` is pre-padded (Kp, Np) bf16 with any per-channel scale already folded
    in.  `x` may be f32 or bf16; it is cast to bf16 for the MXU.  Accumulation
    and the epilogue run in f32.
    """
    M, K = x.shape
    Kp, Np = w.shape
    Nreal = shift.shape[0]

    # --- tile selection -------------------------------------------------
    TM = 512 if M >= 512 else _round_up(max(M, 1), 128)
    Mp = _round_up(M, TM)
    TK = 512 if Kp % 512 == 0 else (256 if Kp % 256 == 0 else 128)
    TN = 256 if Np % 256 == 0 else 128
    # keep >= 2 parallel tiles when possible (dual-TC chips / megacore)
    if (Mp // TM) * (Np // TN) < 2 and Np > 128:
        TN = 128

    xp = jnp.pad(x.astype(jnp.bfloat16), ((0, Mp - M), (0, Kp - K)))
    bp = jnp.pad(shift.astype(jnp.float32), (0, Np - Nreal)).reshape(1, Np)

    in_specs = [
        pl.BlockSpec((TM, TK), lambda i, j, k: (i, k)),
        pl.BlockSpec((TK, TN), lambda i, j, k: (k, j)),
        pl.BlockSpec((1, TN), lambda i, j, k: (0, j)),
    ]
    args = [xp, w, bp]
    if residual is not None:
        rp = jnp.pad(residual.astype(jnp.float32),
                     ((0, Mp - M), (0, Np - Nreal)))
        in_specs.append(pl.BlockSpec((TM, TN), lambda i, j, k: (i, j)))
        args.append(rp)
        kernel = functools.partial(_gemm_res_kernel, relu=relu)
    else:
        kernel = functools.partial(_gemm_kernel, relu=relu)

    out = pl.pallas_call(
        kernel,
        out_shape=jax.ShapeDtypeStruct((Mp, Np), jnp.float32),
        grid_spec=pltpu.PrefetchScalarGridSpec(
            num_scalar_prefetch=0,
            grid=(Mp // TM, Np // TN, Kp // TK),
            in_specs=in_specs,
            out_specs=pl.BlockSpec((TM, TN), lambda i, j, k: (i, j)),
            scratch_shapes=[pltpu.VMEM((TM, TN), jnp.float32)],
        ),
        compiler_params=pltpu.CompilerParams(
            dimension_semantics=("parallel", "parallel", "arbitrary"),
            vmem_limit_bytes=48 * 1024 * 1024),
    )(*args)
    return out[:M, :Nreal]


# ----------------------------------------------------------------------------
# MaxPool2d(3, stride=2, padding=1) — lane-dense VPU max tree over 9 windows
# ----------------------------------------------------------------------------
def _max9_kernel(*refs):
    o_ref = refs[-1]
    m = refs[0][...]
    for r in refs[1:-1]:
        m = jnp.maximum(m, r[...])
    o_ref[...] = m


@jax.jit
def maxpool_3x3_s2(x):
    """x: (N, H, W, C) NHWC -> (N, Ho, Wo, C)."""
    N, H, W, C = x.shape
    Ho = (H + 2 - 3) // 2 + 1
    Wo = (W + 2 - 3) // 2 + 1
    xp = jnp.pad(x, ((0, 0), (1, 1), (1, 1), (0, 0)),
                 constant_values=-jnp.inf)
    views = []
    for i in range(3):
        for j in range(3):
            v = xp[:, i:i + 2 * (Ho - 1) + 1:2, j:j + 2 * (Wo - 1) + 1:2, :]
            views.append(v.reshape(-1))

    P = N * Ho * Wo * C
    LANE = 512
    rows = _round_up(P, LANE * 8) // LANE
    TR = min(512, rows)
    rows = _round_up(rows, TR)
    Pp = rows * LANE
    views = [jnp.pad(v, (0, Pp - P), constant_values=-jnp.inf).reshape(rows, LANE)
             for v in views]

    out = pl.pallas_call(
        _max9_kernel,
        out_shape=jax.ShapeDtypeStruct((rows, LANE), jnp.float32),
        grid=(rows // TR,),
        in_specs=[pl.BlockSpec((TR, LANE), lambda i: (i, 0))] * 9,
        out_specs=pl.BlockSpec((TR, LANE), lambda i: (i, 0)),
    )(*views)
    return out.reshape(-1)[:P].reshape(N, Ho, Wo, C)


# ----------------------------------------------------------------------------
# AdaptiveAvgPool2d(1) — lane-dense (channels-last) row-sum reduction
# ----------------------------------------------------------------------------
def _gap_kernel(x_ref, o_ref, *, denom):
    o_ref[...] = jnp.sum(x_ref[...], axis=1, keepdims=True) * (1.0 / denom)


@jax.jit
def global_avg_pool(x):
    """x: (N, H, W, C) -> (N, 1, 1, C)."""
    N, H, W, C = x.shape
    L = H * W
    xr = x.reshape(N, L, C)
    Lp = _round_up(L, 8)
    Cp = _round_up(C, 128)
    xp = jnp.pad(xr, ((0, 0), (0, Lp - L), (0, Cp - C)))
    out = pl.pallas_call(
        functools.partial(_gap_kernel, denom=float(L)),
        out_shape=jax.ShapeDtypeStruct((N, 1, Cp), jnp.float32),
        grid=(N,),
        in_specs=[pl.BlockSpec((1, Lp, Cp), lambda i: (i, 0, 0))],
        out_specs=pl.BlockSpec((1, 1, Cp), lambda i: (i, 0, 0)),
    )(xp)
    return out[:, :, :C].reshape(N, 1, 1, C)


# ----------------------------------------------------------------------------
# Conv2d (NHWC) = light im2col glue + Pallas GEMM (optional fused residual)
# ----------------------------------------------------------------------------
@functools.partial(jax.jit,
                   static_argnames=("kh", "kw", "stride", "padding",
                                    "dilation", "relu"))
def _conv_impl(x, wT, shift, residual, *, kh, kw, stride, padding, dilation,
               relu):
    N, H, W, Cin = x.shape
    Ho = (H + 2 * padding - dilation * (kh - 1) - 1) // stride + 1
    Wo = (W + 2 * padding - dilation * (kw - 1) - 1) // stride + 1

    xb = x.astype(jnp.bfloat16)          # cast before im2col: halves patch traffic
    if kh == 1 and kw == 1 and padding == 0:
        xs = xb[:, ::stride, ::stride, :] if stride > 1 else xb
        xcol = xs.reshape(N * Ho * Wo, Cin)
    else:
        xpd = jnp.pad(xb, ((0, 0), (padding, padding), (padding, padding),
                           (0, 0)))
        taps = []
        for i in range(kh):
            for j in range(kw):
                hs, ws = i * dilation, j * dilation
                taps.append(xpd[:, hs:hs + stride * (Ho - 1) + 1:stride,
                                   ws:ws + stride * (Wo - 1) + 1:stride, :])
        # patches emitted directly in (N, Ho, Wo, kh*kw*Cin) order — no transpose
        xcol = jnp.concatenate(taps, axis=-1).reshape(N * Ho * Wo, kh * kw * Cin)

    res2d = None if residual is None else residual.reshape(N * Ho * Wo, -1)
    y = fused_matmul(xcol, wT, shift, res2d, relu=relu)
    return y.reshape(N, Ho, Wo, shift.shape[0])


def conv2d(x, p, stride=1, padding=0, dilation=1, relu=False, residual=None):
    """x: NHWC.  p: prepped conv params (bf16 (K,Cout) weights, f32 shift)."""
    N, H, W, _ = x.shape
    kh, kw = p["kh"], p["kw"]
    # Degenerate dilation: every non-center tap samples only zero padding, so
    # the 3x3 dilated conv is exactly a 1x1 conv with the center weights.
    if (kh == 3 and kw == 3 and stride == 1 and padding == dilation
            and dilation >= max(H, W) and "wTc" in p):
        return _conv_impl(x, p["wTc"], p["shift"], residual,
                          kh=1, kw=1, stride=1, padding=0, dilation=1,
                          relu=relu)
    return _conv_impl(x, p["wT"], p["shift"], residual,
                      kh=kh, kw=kw, stride=stride, padding=padding,
                      dilation=dilation, relu=relu)


# ----------------------------------------------------------------------------
# Bilinear resize (align_corners=False) as two Pallas GEMMs; matrices cached
# ----------------------------------------------------------------------------
@functools.lru_cache(maxsize=None)
def _bilinear_weight(out_size, in_size):
    scale = in_size / out_size
    dst = np.arange(out_size, dtype=np.float64)
    src = np.clip((dst + 0.5) * scale - 0.5, 0.0, in_size - 1)
    i0 = np.floor(src).astype(np.int64)
    i1 = np.minimum(i0 + 1, in_size - 1)
    w1 = (src - i0).astype(np.float32)
    w0 = 1.0 - w1
    A = np.zeros((out_size, in_size), dtype=np.float32)
    A[np.arange(out_size), i0] += w0
    A[np.arange(out_size), i1] += w1
    Kp, Np = _round_up(in_size, 128), _round_up(out_size, 128)
    At = np.zeros((Kp, Np), dtype=np.float32)
    At[:in_size, :out_size] = A.T
    return jnp.asarray(At, jnp.bfloat16), jnp.zeros((out_size,), jnp.float32)


def bilinear_resize(x, out_h, out_w):
    """x: (N, H, W, C) NHWC -> (N, C, out_h, out_w) NCHW (final output layout)."""
    N, H, W, C = x.shape
    wT_w, sh_w = _bilinear_weight(out_w, W)
    wT_h, sh_h = _bilinear_weight(out_h, H)
    xc = x.transpose(0, 3, 1, 2)                              # (N, C, H, W), tiny
    xw = fused_matmul(xc.reshape(N * C * H, W), wT_w, sh_w)   # (N*C*H, out_w)
    xw = xw.reshape(N, C, H, out_w).transpose(0, 1, 3, 2).reshape(N * C * out_w, H)
    xh = fused_matmul(xw, wT_h, sh_h)                         # (N*C*out_w, out_h)
    return xh.reshape(N, C, out_w, out_h).transpose(0, 1, 3, 2)


# ----------------------------------------------------------------------------
# Parameters (deterministic synthetic init, eval-mode BN folded into weights)
# ----------------------------------------------------------------------------
LAYER_CFG = [
    # (planes, num_blocks, first_stride, first_dilation, rest_dilation)
    (64, 3, 1, 1, 1),
    (128, 4, 2, 1, 1),
    (256, 6, 1, 1, 2),
    (512, 3, 1, 2, 4),
]


def _prep_conv(w, scale, shift):
    """Fold per-channel scale into weights; pre-transpose/pad/cast once."""
    Cout, Cin, kh, kw = w.shape
    wf = w * scale[:, None, None, None]
    K = kh * kw * Cin
    # rows ordered (kh, kw, Cin) to match NHWC tap concatenation
    wT = wf.transpose(2, 3, 1, 0).reshape(K, Cout)
    Kp, Np = _round_up(K, 128), _round_up(Cout, 128)
    p = dict(wT=jnp.pad(wT, ((0, Kp - K), (0, Np - Cout))).astype(jnp.bfloat16),
             shift=shift.astype(jnp.float32),
             kh=int(kh), kw=int(kw), cin=int(Cin), cout=int(Cout))
    if kh == 3 and kw == 3:
        wc = wf[:, :, 1, 1].T                                  # (Cin, Cout)
        Kc = _round_up(Cin, 128)
        p["wTc"] = jnp.pad(wc, ((0, Kc - Cin),
                                (0, Np - Cout))).astype(jnp.bfloat16)
    return p


def init_params(key, num_classes=11, aux_classes=21):
    counter = iter(range(100000))

    def nk():
        return jax.random.fold_in(key, next(counter))

    def conv_bn(cin, cout, k):
        fan = cin * k * k
        w = jax.random.normal(nk(), (cout, cin, k, k), jnp.float32) / math.sqrt(fan)
        gamma = 1.0 + 0.05 * jax.random.normal(nk(), (cout,), jnp.float32)
        beta = 0.05 * jax.random.normal(nk(), (cout,), jnp.float32)
        rmean = 0.05 * jax.random.normal(nk(), (cout,), jnp.float32)
        rvar = jax.random.uniform(nk(), (cout,), jnp.float32, 0.8, 1.2)
        scale = gamma * jax.lax.rsqrt(rvar + 1e-5)     # folded eval-mode BN
        shift = beta - rmean * scale
        return _prep_conv(w, scale, shift)

    def conv_bias(cin, cout, k):
        fan = cin * k * k
        w = jax.random.normal(nk(), (cout, cin, k, k), jnp.float32) / math.sqrt(fan)
        b = 0.05 * jax.random.normal(nk(), (cout,), jnp.float32)
        return _prep_conv(w, jnp.ones((cout,), jnp.float32), b)

    p = {"stem": conv_bn(3, 64, 7)}
    inplanes = 64
    layers = []
    for planes, nblocks, _stride, _df, _dr in LAYER_CFG:
        blocks = []
        for bi in range(nblocks):
            blk = dict(
                c1=conv_bn(inplanes if bi == 0 else planes * 4, planes, 1),
                c2=conv_bn(planes, planes, 3),
                c3=conv_bn(planes, planes * 4, 1),
            )
            if bi == 0:
                blk["down"] = conv_bn(inplanes, planes * 4, 1)
            blocks.append(blk)
        inplanes = planes * 4
        layers.append(blocks)
    p["layers"] = layers

    p["aspp"] = dict(
        b0=conv_bn(2048, 256, 1),
        b1=conv_bn(2048, 256, 3),
        b2=conv_bn(2048, 256, 3),
        b3=conv_bn(2048, 256, 3),
        pool=conv_bn(2048, 256, 1),
        project=conv_bn(5 * 256, 256, 1),
    )
    p["cls_conv"] = conv_bn(256, 256, 3)
    p["cls_final"] = conv_bias(256, num_classes, 1)
    p["aux_conv"] = conv_bn(1024, 256, 3)
    p["aux_final"] = conv_bias(256, aux_classes, 1)
    return p


# ----------------------------------------------------------------------------
# Model forward (internal layout: NHWC)
# ----------------------------------------------------------------------------
def aspp_forward(x, p):
    N, H, W, _ = x.shape
    branches = [conv2d(x, p["b0"], relu=True)]
    for name, rate in (("b1", 12), ("b2", 24), ("b3", 36)):
        branches.append(conv2d(x, p[name], padding=rate, dilation=rate,
                               relu=True))
    pooled = global_avg_pool(x)                        # (N, 1, 1, 2048)
    pb = conv2d(pooled, p["pool"], relu=True)          # (N, 1, 1, 256)
    # bilinear upsample from a 1x1 map == constant broadcast (exact)
    pb = jnp.broadcast_to(pb, (N, H, W, pb.shape[3]))
    branches.append(pb)
    cat = jnp.concatenate(branches, axis=-1)           # (N, H, W, 1280)
    out = conv2d(cat, p["project"], relu=True)
    # Dropout(0.5): identity under inference semantics
    return out


def deeplabv3_forward(params, x):
    in_h, in_w = x.shape[2], x.shape[3]
    x = jnp.transpose(x, (0, 2, 3, 1))                 # NCHW -> NHWC once

    # --- ResNet-50 backbone (output stride 8) ---
    x = conv2d(x, params["stem"], stride=2, padding=3, relu=True)
    x = maxpool_3x3_s2(x)

    feats = {}
    for li, (blocks, cfg) in enumerate(zip(params["layers"], LAYER_CFG)):
        _planes, _nb, first_stride, dil_first, dil_rest = cfg
        for bi, blk in enumerate(blocks):
            s = first_stride if bi == 0 else 1
            dil = dil_first if bi == 0 else dil_rest
            identity = x
            out = conv2d(x, blk["c1"], relu=True)
            out = conv2d(out, blk["c2"], stride=s, padding=dil, dilation=dil,
                         relu=True)
            if "down" in blk:
                identity = conv2d(x, blk["down"], stride=s, relu=False)
            # c3 conv with residual add + ReLU fused into the GEMM epilogue
            x = conv2d(out, blk["c3"], relu=True, residual=identity)
        if li == 2:
            feats["aux"] = x     # layer3 output (1024 ch)
    feats["out"] = x             # layer4 output (2048 ch)

    # --- DeepLabHead classifier ---
    c = aspp_forward(feats["out"], params["aspp"])
    c = conv2d(c, params["cls_conv"], padding=1, relu=True)
    c = conv2d(c, params["cls_final"], relu=False)
    out = bilinear_resize(c, in_h, in_w)               # -> NCHW

    # --- FCNHead aux classifier ---
    a = conv2d(feats["aux"], params["aux_conv"], padding=1, relu=True)
    # Dropout(0.1): identity under inference semantics
    a = conv2d(a, params["aux_final"], relu=False)
    aux = bilinear_resize(a, in_h, in_w)               # -> NCHW

    return {"out": out, "aux": aux}


# ----------------------------------------------------------------------------
if __name__ == "__main__":
    key = jax.random.PRNGKey(0)
    params = init_params(jax.random.fold_in(key, 1), num_classes=11)
    x = jax.random.normal(jax.random.fold_in(key, 2), (2, 3, 64, 64),
                          jnp.float32)

    result = deeplabv3_forward(params, x)
    result = {k: jax.block_until_ready(v) for k, v in result.items()}

    assert result["out"].shape == (2, 11, 64, 64), result["out"].shape
    assert result["aux"].shape == (2, 21, 64, 64), result["aux"].shape
    assert bool(jnp.all(jnp.isfinite(result["out"])))
    assert bool(jnp.all(jnp.isfinite(result["aux"])))
    print("KERNEL_OK")
</pallas_src>

<mosaic_0001>
module attributes {stable_mosaic.version = 11 : i64} {
  func.func @_gemm_kernel(%arg0: i32, %arg1: i32, %arg2: i32, %arg3: memref<512x256xbf16, #tpu.memory_space<vmem>>, %arg4: memref<256x128xbf16, #tpu.memory_space<vmem>>, %arg5: memref<1x128xf32, #tpu.memory_space<vmem>>, %arg6: memref<512x128xf32, #tpu.memory_space<vmem>>, %arg7: memref<512x128xf32, #tpu.memory_space<vmem>>) attributes {dimension_semantics = [#tpu.dimension_semantics<parallel>, #tpu.dimension_semantics<parallel>, #tpu.dimension_semantics<arbitrary>], iteration_bounds = array<i64: 4, 1, 1>, scalar_prefetch = 0 : i64, scratch_operands = 1 : i64, tpu.core_type = #tpu.core_type<tc>, window_params = [{transform_indices = @transform_0, window_bounds = array<i64: 512, 256>}, {transform_indices = @transform_1, window_bounds = array<i64: 256, 128>}, {transform_indices = @transform_2, window_bounds = array<i64: 1, 128>}, {transform_indices = @transform_3, window_bounds = array<i64: 512, 128>}]} {
    %c0_i32 = arith.constant 0 : i32
    %0 = arith.cmpi eq, %arg2, %c0_i32 : i32
    %1 = arith.extui %0 : i1 to i32
    %c0_i32_0 = arith.constant 0 : i32
    %2 = arith.cmpi ne, %1, %c0_i32_0 : i32
    scf.if %2 {
      %cst_10 = arith.constant 0.000000e+00 : f32
      %12 = vector.broadcast %cst_10 : f32 to vector<512x128xf32>
      %c0_11 = arith.constant 0 : index
      %c0_12 = arith.constant 0 : index
      %13 = vector.load %arg7[%c0_11, %c0_12] : memref<512x128xf32, #tpu.memory_space<vmem>>, vector<512x128xf32>
      tpu.vector_store %arg7[%c0_11, %c0_12], %12 {strides = array<i32>} : memref<512x128xf32, #tpu.memory_space<vmem>>, vector<512x128xf32>,
    } else {
    }
    %c0 = arith.constant 0 : index
    %c0_1 = arith.constant 0 : index
    %3 = vector.load %arg7[%c0, %c0_1] : memref<512x128xf32, #tpu.memory_space<vmem>>, vector<512x128xf32>
    %c0_2 = arith.constant 0 : index
    %c0_3 = arith.constant 0 : index
    %4 = vector.load %arg3[%c0_2, %c0_3] : memref<512x256xbf16, #tpu.memory_space<vmem>>, vector<512x256xbf16>
    %c0_4 = arith.constant 0 : index
    %c0_5 = arith.constant 0 : index
    %5 = vector.load %arg4[%c0_4, %c0_5] : memref<256x128xbf16, #tpu.memory_space<vmem>>, vector<256x128xbf16>
    %cst = arith.constant dense<0.000000e+00> : vector<512x128xf32>
    %6 = tpu.matmul %4, %5, %cst {dimension_numbers = #tpu.dot_dimension_numbers<[1], [0], [0], [1], [0, 0, 1, 1], [], []>} : vector<512x256xbf16>, vector<256x128xbf16>, vector<512x128xf32> -> vector<512x128xf32>
    %7 = arith.addf %3, %6 : vector<512x128xf32>
    %c0_6 = arith.constant 0 : index
    %c0_7 = arith.constant 0 : index
    %8 = vector.load %arg7[%c0_6, %c0_7] : memref<512x128xf32, #tpu.memory_space<vmem>>, vector<512x128xf32>
    tpu.vector_store %arg7[%c0_6, %c0_7], %7 {strides = array<i32>} : memref<512x128xf32, #tpu.memory_space<vmem>>, vector<512x128xf32>,
    %c0_i32_8 = arith.constant 0 : i32
    %9 = arith.cmpi eq, %arg2, %c0_i32_8 : i32
    %10 = arith.extui %9 : i1 to i32
    %c0_i32_9 = arith.constant 0 : i32
    %11 = arith.cmpi ne, %10, %c0_i32_9 : i32
    scf.if %11 {
      %c0_10 = arith.constant 0 : index
      %c0_11 = arith.constant 0 : index
      %12 = vector.load %arg7[%c0_10, %c0_11] : memref<512x128xf32, #tpu.memory_space<vmem>>, vector<512x128xf32>
      %c0_12 = arith.constant 0 : index
      %c0_13 = arith.constant 0 : index
      %13 = vector.load %arg5[%c0_12, %c0_13] : memref<1x128xf32, #tpu.memory_space<vmem>>, vector<1x128xf32>
      %14 = vector.broadcast %13 : vector<1x128xf32> to vector<512x128xf32>
      %15 = arith.addf %12, %14 : vector<512x128xf32>
      %cst_14 = arith.constant 0.000000e+00 : f32
      %16 = vector.broadcast %cst_14 : f32 to vector<512x128xf32>
      %17 = arith.maximumf %15, %16 : vector<512x128xf32>
      %c0_15 = arith.constant 0 : index
      %c0_16 = arith.constant 0 : index
      %18 = vector.load %arg6[%c0_15, %c0_16] : memref<512x128xf32, #tpu.memory_space<vmem>>, vector<512x128xf32>
      tpu.vector_store %arg6[%c0_15, %c0_16], %17 {strides = array<i32>} : memref<512x128xf32, #tpu.memory_space<vmem>>, vector<512x128xf32>,
    } else {
    }
    return
  }
  func.func @transform_0(%arg0: i32, %arg1: i32, %arg2: i32) -> (i32, i32) {
    %c0_i32 = arith.constant 0 : i32
    return %arg0, %arg2 : i32, i32
  }
  func.func @transform_1(%arg0: i32, %arg1: i32, %arg2: i32) -> (i32, i32) {
    %c0_i32 = arith.constant 0 : i32
    return %arg2, %arg1 : i32, i32
  }
  func.func @transform_2(%arg0: i32, %arg1: i32, %arg2: i32) -> (i32, i32) {
    %c0_i32 = arith.constant 0 : i32
    %c0_i32_0 = arith.constant 0 : i32
    return %c0_i32, %arg1 : i32, i32
  }
  func.func @transform_3(%arg0: i32, %arg1: i32, %arg2: i32) -> (i32, i32) {
    %c0_i32 = arith.constant 0 : i32
    return %arg0, %arg1 : i32, i32
  }
}

</mosaic_0001>

<bundles_post_ra>
// kernel: fused_matmul.1
= control target key start
LH: loop header
LB: loop body
LE: loop exit
PB: predicated region body
PF: predicated region fallthrough
CT: control target
= control target key end

     0   :  { %s2019_s12 = smov 0   ;;  %s2021_s13 = smov 0   ;;  %s2340_s0 = inlined_call_operand.vmem [shape: bf16[2048,256], index: 0, kind: input, shape index: {}]   ;;  %s2341_s1 = inlined_call_operand.vmem [shape: bf16[256,128], index: 1, kind: input, shape index: {}]   ;;  %s2342_s2 = inlined_call_operand.vmem [shape: f32[1,128], index: 2, kind: input, shape index: {}]   ;;  %s2343_s3 = inlined_call_operand.vmem [shape: f32[2048,128], index: 3, kind: output, shape index: {}]  }
   0x1   :  { %s2023_s14 = smov 0  }
   0x2 LB: > { %s32_s15 = sadd.s32 1, %s1992_s13  ;;  %p1715_p0 = scmp.ge.s32.totalorder %s1996_s14, 1  ;;  %s1996_s14 = sphi %s2023_s14, %s13_s14   ;;  %s1992_s13 = sphi %s2021_s13, %s2345_s13   ;;  %s1988_s12 = sphi %s2019_s12, %s2344_s12  }
   0x3   : > { %p34_p1 = scmp.ge.s32.totalorder %s32_s15, 4  ;;  %p191_p2 = scmp.lt.s32.totalorder %s1996_s14, 5 }
   0x5   : > { %s2347_s15 = smov (%p34_p1, %s32_s15), 0  ;;  %p192_p3 = pnand %p1715_p0, %p191_p2 }
   0x6   : > { %v1862_v0 = vld [vmem:[%s2341_s1] sm:$0xff] (!%p192_p3)   ;;  %v1998_v1 = vmov (!%p192_p3), 0   ;;  %s1716_s18 = sshll.u32 (!%p192_p3), %s1988_s12, 6  ;;  %v1863_v2 = vld [vmem:[%s2341_s1 + $0x8] sm:$0xff] (!%p192_p3)   ;;  %v1864_v3 = vld [vmem:[%s2341_s1 + $0x10] sm:$0xff] (!%p192_p3)  }
   0x7   : > { %195 = sbr.rel (%p192_p3) target bundleno = 410 (0x19a), region = 32  ;;  %912 = vmatprep.subr.bf16.mxu0 (!%p192_p3), %v1998_v1  ;;  %1805 = vmatprep.subr.bf16.mxu1 (!%p192_p3), %v1998_v1  ;;  %p236_p4 = scmp.lt.s32.totalorder (!%p192_p3), %s1716_s18, 255  ;;  %v1865_v4 = vld [vmem:[%s2341_s1 + $0x18] sm:$0xff] (!%p192_p3)   ;;  %v1866_v5 = vld [vmem:[%s2341_s1 + $0x20] sm:$0xff] (!%p192_p3)   ;;  %v1867_v7 = vld [vmem:[%s2341_s1 + $0x28] sm:$0xff] (!%p192_p3)  }
   0x8   : > { %913 = vmatpush1.bf16.msra.mxu0 (!%p192_p3), %v1862_v0  ;;  %1821 = vmatpush1.bf16.msra.mxu1 (!%p192_p3), %v1862_v0  ;;  %v1868_v9 = vld [vmem:[%s2341_s1 + $0x30] sm:$0xff] (!%p192_p3)   ;;  %v1869_v10 = vld [vmem:[%s2341_s1 + $0x38] sm:$0xff] (!%p192_p3)   ;;  %v1870_v11 = vld [vmem:[%s2341_s1 + $0x40] sm:$0xff] (!%p192_p3)  }
   0x9   : > { %914 = vmatprep.subr.bf16.mxu0 (!%p192_p3), %v1998_v1  ;;  %1806 = vmatprep.subr.bf16.mxu1 (!%p192_p3), %v1998_v1  ;;  %v1871_v12 = vld [vmem:[%s2341_s1 + $0x48] sm:$0xff] (!%p192_p3)   ;;  %v1872_v13 = vld [vmem:[%s2341_s1 + $0x50] sm:$0xff] (!%p192_p3)   ;;  %v1873_v14 = vld [vmem:[%s2341_s1 + $0x58] sm:$0xff] (!%p192_p3)  }
   0xa   : > { %v1874_v15 = vld [vmem:[%s2341_s1 + $0x60] sm:$0xff] (!%p192_p3)   ;;  %v1875_v16 = vld [vmem:[%s2341_s1 + $0x68] sm:$0xff] (!%p192_p3)   ;;  %v1876_v17 = vld [vmem:[%s2341_s1 + $0x70] sm:$0xff] (!%p192_p3)  }
   0xb   : > { %v1877_v18 = vld [vmem:[%s2341_s1 + $0x78] sm:$0xff] (!%p192_p3)  }
   0xc   : > { %915 = vmatpush1.bf16.msra.mxu0 (!%p192_p3), %v1863_v2  ;;  %1822 = vmatpush1.bf16.msra.mxu1 (!%p192_p3), %v1863_v2 }
   0xd   : > { %916 = vmatprep.subr.bf16.mxu0 (!%p192_p3), %v1998_v1  ;;  %1807 = vmatprep.subr.bf16.mxu1 (!%p192_p3), %v1998_v1 }
   0xe   : > { %s2349_s18 = smov (!%p236_p4, %s1716_s18), 255 }
   0xf   : > { %s1804_s25 = sshll.u32 %s2349_s18, 3 }
  0x10   : > { %917 = vmatpush1.bf16.msra.mxu0 %v1864_v3  ;;  %1823 = vmatpush1.bf16.msra.mxu1 %v1864_v3  ;;  %s2068_s30 = scalar_lea.vmem %s2340_s0, %s1804_s25 }
  0x11   : > { %918 = vmatprep.subr.bf16.mxu0 %v1998_v1  ;;  %1808 = vmatprep.subr.bf16.mxu1 %v1998_v1  ;;  %v1880_v6 = vld [vmem:[%s2068_s30 + $0x4] ss:$8 sps:$4 sm:$0xff]   ;;  %v1878_v19 = vld [vmem:[%s2068_s30] ss:$8 sps:$4 sm:$0xff]   ;;  %v1884_v21 = vld [vmem:[%s2068_s30 + $0x14] ss:$8 sps:$4 sm:$0xff]  }
  0x12   : > { %v1883_v8 = vld [vmem:[%s2068_s30 + $0x104] ss:$8 sps:$4 sm:$0xff]   ;;  %944 = vmatprep.mubr.bf16.mxu0 %v1880_v6  ;;  %v1881_v20 = vld [vmem:[%s2068_s30 + $0x100] ss:$8 sps:$4 sm:$0xff]   ;;  %v1886_v22 = vld [vmem:[%s2068_s30 + $0x114] ss:$8 sps:$4 sm:$0xff]  }
  0x13   : > { %1072 = vmatprep.mubr.bf16.mxu1 %v1883_v8  ;;  %v1888_v23 = vld [vmem:[%s2068_s30 + $0x10] ss:$8 sps:$4 sm:$0xff]   ;;  %v1890_v25 = vld [vmem:[%s2068_s30 + $0x24] ss:$8 sps:$4 sm:$0xff]   ;;  %v1894_v27 = vld [vmem:[%s2068_s30 + $0x20] ss:$8 sps:$4 sm:$0xff]  }
  0x14   : > { %919 = vmatpush1.bf16.msra.mxu0 %v1865_v4  ;;  %1824 = vmatpush1.bf16.msra.mxu1 %v1865_v4  ;;  %v1889_v24 = vld [vmem:[%s2068_s30 + $0x110] ss:$8 sps:$4 sm:$0xff]   ;;  %v1892_v26 = vld [vmem:[%s2068_s30 + $0x124] ss:$8 sps:$4 sm:$0xff]   ;;  %v1895_v28 = vld [vmem:[%s2068_s30 + $0x120] ss:$8 sps:$4 sm:$0xff]  }
  0x15   : > { %920 = vmatprep.subr.bf16.mxu0 %v1998_v1  ;;  %1809 = vmatprep.subr.bf16.mxu1 %v1998_v1  ;;  %v1896_v29 = vld [vmem:[%s2068_s30 + $0x34] ss:$8 sps:$4 sm:$0xff]   ;;  %v1900_v31 = vld [vmem:[%s2068_s30 + $0x30] ss:$8 sps:$4 sm:$0xff]   ;;  %v1902_v33 = vld [vmem:[%s2068_s30 + $0x44] ss:$8 sps:$4 sm:$0xff]  }
  0x16   : > { %v1898_v30 = vld [vmem:[%s2068_s30 + $0x134] ss:$8 sps:$4 sm:$0xff]   ;;  %v1901_v32 = vld [vmem:[%s2068_s30 + $0x130] ss:$8 sps:$4 sm:$0xff]   ;;  %v1904_v34 = vld [vmem:[%s2068_s30 + $0x144] ss:$8 sps:$4 sm:$0xff]  }
  0x17   : > { %v1906_v35 = vld [vmem:[%s2068_s30 + $0x40] ss:$8 sps:$4 sm:$0xff]   ;;  %v1908_v37 = vld [vmem:[%s2068_s30 + $0x54] ss:$8 sps:$4 sm:$0xff]   ;;  %v1912_v39 = vld [vmem:[%s2068_s30 + $0x50] ss:$8 sps:$4 sm:$0xff]  }
  0x18   : > { %921 = vmatpush1.bf16.msra.mxu0 %v1866_v5  ;;  %1825 = vmatpush1.bf16.msra.mxu1 %v1866_v5  ;;  %v1907_v36 = vld [vmem:[%s2068_s30 + $0x140] ss:$8 sps:$4 sm:$0xff]   ;;  %v1910_v38 = vld [vmem:[%s2068_s30 + $0x154] ss:$8 sps:$4 sm:$0xff]   ;;  %v1913_v40 = vld [vmem:[%s2068_s30 + $0x150] ss:$8 sps:$4 sm:$0xff]  }
  0x19   : > { %922 = vmatprep.subr.bf16.mxu0 %v1998_v1  ;;  %1810 = vmatprep.subr.bf16.mxu1 %v1998_v1  ;;  %v1914_v41 = vld [vmem:[%s2068_s30 + $0x64] ss:$8 sps:$4 sm:$0xff]   ;;  %v1918_v43 = vld [vmem:[%s2068_s30 + $0x60] ss:$8 sps:$4 sm:$0xff]   ;;  %v1920_v45 = vld [vmem:[%s2068_s30 + $0x74] ss:$8 sps:$4 sm:$0xff]  }
  0x1a   : > { %v1916_v42 = vld [vmem:[%s2068_s30 + $0x164] ss:$8 sps:$4 sm:$0xff]   ;;  %v1919_v44 = vld [vmem:[%s2068_s30 + $0x160] ss:$8 sps:$4 sm:$0xff]   ;;  %v1922_v46 = vld [vmem:[%s2068_s30 + $0x174] ss:$8 sps:$4 sm:$0xff]  }
  0x1b   : > { %v1924_v47 = vld [vmem:[%s2068_s30 + $0x70] ss:$8 sps:$4 sm:$0xff]   ;;  %v1926_v49 = vld [vmem:[%s2068_s30 + $0x84] ss:$8 sps:$4 sm:$0xff]   ;;  %v1930_v51 = vld [vmem:[%s2068_s30 + $0x80] ss:$8 sps:$4 sm:$0xff]  }
  0x1c   : > { %923 = vmatpush1.bf16.msra.mxu0 %v1867_v7  ;;  %1826 = vmatpush1.bf16.msra.mxu1 %v1867_v7  ;;  %v1925_v48 = vld [vmem:[%s2068_s30 + $0x170] ss:$8 sps:$4 sm:$0xff]   ;;  %v1928_v50 = vld [vmem:[%s2068_s30 + $0x184] ss:$8 sps:$4 sm:$0xff]   ;;  %v1931_v52 = vld [vmem:[%s2068_s30 + $0x180] ss:$8 sps:$4 sm:$0xff]  }
  0x1d   : > { %924 = vmatprep.subr.bf16.mxu0 %v1998_v1  ;;  %1811 = vmatprep.subr.bf16.mxu1 %v1998_v1  ;;  %v1932_v53 = vld [vmem:[%s2068_s30 + $0x94] ss:$8 sps:$4 sm:$0xff]   ;;  %v1936_v55 = vld [vmem:[%s2068_s30 + $0x90] ss:$8 sps:$4 sm:$0xff]   ;;  %v1938_v57 = vld [vmem:[%s2068_s30 + $0xa4] ss:$8 sps:$4 sm:$0xff]  }
  0x1e   : > { %v1934_v54 = vld [vmem:[%s2068_s30 + $0x194] ss:$8 sps:$4 sm:$0xff]   ;;  %v1937_v56 = vld [vmem:[%s2068_s30 + $0x190] ss:$8 sps:$4 sm:$0xff]   ;;  %v1940_v58 = vld [vmem:[%s2068_s30 + $0x1a4] ss:$8 sps:$4 sm:$0xff]  }
  0x1f   : > { %v1942_v59 = vld [vmem:[%s2068_s30 + $0xa0] ss:$8 sps:$4 sm:$0xff]   ;;  %v1944_v61 = vld [vmem:[%s2068_s30 + $0xb4] ss:$8 sps:$4 sm:$0xff]   ;;  %v1948_v63 = vld [vmem:[%s2068_s30 + $0xb0] ss:$8 sps:$4 sm:$0xff]  }
  0x20   : > { %925 = vmatpush1.bf16.msra.mxu0 %v1868_v9  ;;  %1827 = vmatpush1.bf16.msra.mxu1 %v1868_v9  ;;  %v1943_v60 = vld [vmem:[%s2068_s30 + $0x1a0] ss:$8 sps:$4 sm:$0xff]   ;;  %v1946_v62 = vld [vmem:[%s2068_s30 + $0x1b4] ss:$8 sps:$4 sm:$0xff]   ;;  %v1949_v0 = vld [vmem:[%s2068_s30 + $0x1b0] ss:$8 sps:$4 sm:$0xff]  }
  0x21   : > { %926 = vmatprep.subr.bf16.mxu0 %v1998_v1  ;;  %1812 = vmatprep.subr.bf16.mxu1 %v1998_v1  ;;  %v1952_v2 = vld [vmem:[%s2068_s30 + $0x1c4] ss:$8 sps:$4 sm:$0xff]   ;;  %v1954_v3 = vld [vmem:[%s2068_s30 + $0xc0] ss:$8 sps:$4 sm:$0xff]   ;;  %v1956_v5 = vld [vmem:[%s2068_s30 + $0xd4] ss:$8 sps:$4 sm:$0xff]  }
  0x22   : > { %v1955_v4 = vld [vmem:[%s2068_s30 + $0x1c0] ss:$8 sps:$4 sm:$0xff]   ;;  %v1958_v6 = vld [vmem:[%s2068_s30 + $0x1d4] ss:$8 sps:$4 sm:$0xff]   ;;  %v1960_v7 = vld [vmem:[%s2068_s30 + $0xd0] ss:$8 sps:$4 sm:$0xff]  }
  0x23   : > { %v1961_v8 = vld [vmem:[%s2068_s30 + $0x1d0] ss:$8 sps:$4 sm:$0xff]   ;;  %v1962_v9 = vld [vmem:[%s2068_s30 + $0xe4] ss:$8 sps:$4 sm:$0xff]  }
  0x24   : > { %927 = vmatpush1.bf16.msra.mxu0 %v1869_v10  ;;  %1828 = vmatpush1.bf16.msra.mxu1 %v1869_v10  ;;  %v1964_v10 = vld [vmem:[%s2068_s30 + $0x1e4] ss:$8 sps:$4 sm:$0xff]  }
  0x25   : > { %928 = vmatprep.subr.bf16.mxu0 %v1998_v1  ;;  %1813 = vmatprep.subr.bf16.mxu1 %v1998_v1 }
  0x28   : > { %929 = vmatpush1.bf16.msra.mxu0 %v1870_v11  ;;  %1829 = vmatpush1.bf16.msra.mxu1 %v1870_v11  ;;  %v1966_v11 = vld [vmem:[%s2068_s30 + $0xe0] ss:$8 sps:$4 sm:$0xff]  }
  0x29   : > { %930 = vmatprep.subr.bf16.mxu0 %v1998_v1  ;;  %1814 = vmatprep.subr.bf16.mxu1 %v1998_v1 }
  0x2c   : > { %931 = vmatpush1.bf16.msra.mxu0 %v1871_v12  ;;  %1830 = vmatpush1.bf16.msra.mxu1 %v1871_v12  ;;  %v1967_v12 = vld [vmem:[%s2068_s30 + $0x1e0] ss:$8 sps:$4 sm:$0xff]  }
  0x2d   : > { %932 = vmatprep.subr.bf16.mxu0 %v1998_v1  ;;  %1815 = vmatprep.subr.bf16.mxu1 %v1998_v1 }
  0x30   : > { %933 = vmatpush1.bf16.msra.mxu0 %v1872_v13  ;;  %1831 = vmatpush1.bf16.msra.mxu1 %v1872_v13  ;;  %v1968_v13 = vld [vmem:[%s2068_s30 + $0xf4] ss:$8 sps:$4 sm:$0xff]  }
  0x31   : > { %934 = vmatprep.subr.bf16.mxu0 %v1998_v1  ;;  %1816 = vmatprep.subr.bf16.mxu1 %v1998_v1 }
  0x34   : > { %935 = vmatpush1.bf16.msra.mxu0 %v1873_v14  ;;  %1832 = vmatpush1.bf16.msra.mxu1 %v1873_v14  ;;  %v1970_v14 = vld [vmem:[%s2068_s30 + $0x1f4] ss:$8 sps:$4 sm:$0xff]  }
  0x35   : > { %936 = vmatprep.subr.bf16.mxu0 %v1998_v1  ;;  %1817 = vmatprep.subr.bf16.mxu1 %v1998_v1 }
  0x38   : > { %937 = vmatpush1.bf16.msra.mxu0 %v1874_v15  ;;  %1833 = vmatpush1.bf16.msra.mxu1 %v1874_v15  ;;  %v1972_v15 = vld [vmem:[%s2068_s30 + $0xf0] ss:$8 sps:$4 sm:$0xff]  }
  0x39   : > { %938 = vmatprep.subr.bf16.mxu0 %v1998_v1  ;;  %1818 = vmatprep.subr.bf16.mxu1 %v1998_v1 }
  0x3c   : > { %939 = vmatpush1.bf16.msra.mxu0 %v1875_v16  ;;  %1834 = vmatpush1.bf16.msra.mxu1 %v1875_v16  ;;  %v1973_v16 = vld [vmem:[%s2068_s30 + $0x1f0] ss:$8 sps:$4 sm:$0xff]  }
  0x3d   : > { %940 = vmatprep.subr.bf16.mxu0 %v1998_v1  ;;  %1819 = vmatprep.subr.bf16.mxu1 %v1998_v1 }
  0x40   : > { %941 = vmatpush1.bf16.msra.mxu0 %v1876_v17  ;;  %1835 = vmatpush1.bf16.msra.mxu1 %v1876_v17  ;;  %v2194_v17 = vld [vmem:[%s2342_s2] ss:$0 sm:$0xff] }
  0x41   : > { %942 = vmatprep.subr.bf16.mxu0 %v1998_v1  ;;  %1820 = vmatprep.subr.bf16.mxu1 %v1998_v1  ;;  %v1950_v1 = vld [vmem:[%s2068_s30 + $0xc4] ss:$8 sps:$4 sm:$0xff]   ;;  %s2203_s30 = scalar_lea.vmem %s2343_s3, %s1804_s25 }
  0x44   : > { %943 = vmatpush1.bf16.msra.mxu0 %v1877_v18  ;;  %1836 = vmatpush1.bf16.msra.mxu1 %v1877_v18 }
  0x47   : > { %945 = vmatmul.mubr.bf16.vlgmr.msra.gmra.mrb[0].mxu0 %v1878_v19  ;;  %1073 = vmatmul.mubr.bf16.vlgmr.msra.gmra.mrb[0].mxu1 %v1881_v20 }
  0x48   : > { %952 = vmatprep.mubr.bf16.mxu0 %v1884_v21  ;;  %1080 = vmatprep.mubr.bf16.mxu1 %v1886_v22 }
  0x4f   : > { %953 = vmatmul.mubr.bf16.gmra.mrb[4].mxu0 %v1888_v23  ;;  %1081 = vmatmul.mubr.bf16.gmra.mrb[4].mxu1 %v1889_v24 }
  0x50   : > { %960 = vmatprep.mubr.bf16.mxu0 %v1890_v25  ;;  %1088 = vmatprep.mubr.bf16.mxu1 %v1892_v26 }
  0x57   : > { %961 = vmatmul.mubr.bf16.gmra.mrb[8].mxu0 %v1894_v27  ;;  %1089 = vmatmul.mubr.bf16.gmra.mrb[8].mxu1 %v1895_v28 }
  0x58   : > { %968 = vmatprep.mubr.bf16.mxu0 %v1896_v29  ;;  %1096 = vmatprep.mubr.bf16.mxu1 %v1898_v30 }
  0x5f   : > { %969 = vmatmul.mubr.bf16.gmra.mrb[12].mxu0 %v1900_v31  ;;  %1097 = vmatmul.mubr.bf16.gmra.mrb[12].mxu1 %v1901_v32 }
  0x60   : > { %976 = vmatprep.mubr.bf16.mxu0 %v1902_v33  ;;  %1104 = vmatprep.mubr.bf16.mxu1 %v1904_v34 }
  0x67   : > { %977 = vmatmul.mubr.bf16.gmra.mrb[16].mxu0 %v1906_v35  ;;  %1105 = vmatmul.mubr.bf16.gmra.mrb[16].mxu1 %v1907_v36 }
  0x68   : > { %984 = vmatprep.mubr.bf16.mxu0 %v1908_v37  ;;  %1112 = vmatprep.mubr.bf16.mxu1 %v1910_v38 }
  0x6f   : > { %985 = vmatmul.mubr.bf16.gmra.mrb[20].mxu0 %v1912_v39  ;;  %1113 = vmatmul.mubr.bf16.gmra.mrb[20].mxu1 %v1913_v40 }
  0x70   : > { %992 = vmatprep.mubr.bf16.mxu0 %v1914_v41  ;;  %1120 = vmatprep.mubr.bf16.mxu1 %v1916_v42 }
  0x77   : > { %993 = vmatmul.mubr.bf16.gmra.mrb[24].mxu0 %v1918_v43  ;;  %1121 = vmatmul.mubr.bf16.gmra.mrb[24].mxu1 %v1919_v44 }
  0x78   : > { %1000 = vmatprep.mubr.bf16.mxu0 %v1920_v45  ;;  %1128 = vmatprep.mubr.bf16.mxu1 %v1922_v46 }
  0x7f   : > { %1001 = vmatmul.mubr.bf16.gmra.mrb[28].mxu0 %v1924_v47  ;;  %1129 = vmatmul.mubr.bf16.gmra.mrb[28].mxu1 %v1925_v48 }
  0x80   : > { %1008 = vmatprep.mubr.bf16.mxu0 %v1926_v49  ;;  %1136 = vmatprep.mubr.bf16.mxu1 %v1928_v50 }
  0x87   : > { %1009 = vmatmul.mubr.bf16.gmra.mrb[32].mxu0 %v1930_v51  ;;  %1137 = vmatmul.mubr.bf16.gmra.mrb[32].mxu1 %v1931_v52 }
  0x88   : > { %1016 = vmatprep.mubr.bf16.mxu0 %v1932_v53  ;;  %1144 = vmatprep.mubr.bf16.mxu1 %v1934_v54 }
  0x8f   : > { %1017 = vmatmul.mubr.bf16.gmra.mrb[36].mxu0 %v1936_v55  ;;  %1145 = vmatmul.mubr.bf16.gmra.mrb[36].mxu1 %v1937_v56 }
  0x90   : > { %1024 = vmatprep.mubr.bf16.mxu0 %v1938_v57  ;;  %1152 = vmatprep.mubr.bf16.mxu1 %v1940_v58 }
  0x97   : > { %1025 = vmatmul.mubr.bf16.gmra.mrb[40].mxu0 %v1942_v59  ;;  %1153 = vmatmul.mubr.bf16.gmra.mrb[40].mxu1 %v1943_v60 }
  0x98   : > { %1032 = vmatprep.mubr.bf16.mxu0 %v1944_v61  ;;  %1160 = vmatprep.mubr.bf16.mxu1 %v1946_v62 }
  0x9f   : > { %1033 = vmatmul.mubr.bf16.gmra.mrb[44].mxu0 %v1948_v63  ;;  %1161 = vmatmul.mubr.bf16.gmra.mrb[44].mxu1 %v1949_v0 }
  0xa0   : > { %1040 = vmatprep.mubr.bf16.mxu0 %v1950_v1  ;;  %1168 = vmatprep.mubr.bf16.mxu1 %v1952_v2 }
  0xa7   : > { %1041 = vmatmul.mubr.bf16.gmra.mrb[48].mxu0 %v1954_v3  ;;  %1169 = vmatmul.mubr.bf16.gmra.mrb[48].mxu1 %v1955_v4 }
  0xa8   : > { %1048 = vmatprep.mubr.bf16.mxu0 %v1956_v5  ;;  %1176 = vmatprep.mubr.bf16.mxu1 %v1958_v6 }
  0xaf   : > { %1049 = vmatmul.mubr.bf16.gmra.mrb[52].mxu0 %v1960_v7  ;;  %1177 = vmatmul.mubr.bf16.gmra.mrb[52].mxu1 %v1961_v8 }
  0xb0   : > { %1056 = vmatprep.mubr.bf16.mxu0 %v1962_v9  ;;  %1184 = vmatprep.mubr.bf16.mxu1 %v1964_v10 }
  0xb7   : > { %1057 = vmatmul.mubr.bf16.gmra.mrb[56].mxu0 %v1966_v11  ;;  %1185 = vmatmul.mubr.bf16.gmra.mrb[56].mxu1 %v1967_v12 }
  0xb8   : > { %1064 = vmatprep.mubr.bf16.mxu0 %v1968_v13  ;;  %1192 = vmatprep.mubr.bf16.mxu1 %v1970_v14 }
  0xbf   : > { %1065 = vmatmul.mubr.bf16.gmra.mrb[60].mxu0 %v1972_v15  ;;  %1193 = vmatmul.mubr.bf16.gmra.mrb[60].mxu1 %v1973_v16 }
 0x11a   : > { %v946_v18 = vpop.f32.mrb[0].mxu0  ;;  %v1074_v19 = vpop.f32.mrb[0].mxu1 }
 0x11b   : > { %v1403_v20 = vadd.f32 %v2194_v17, %v946_v18  ;;  %v1435_v21 = vadd.f32 %v2194_v17, %v1074_v19  ;;  %v948_v22 = vpop.f32.mrb[1].mxu0  ;;  %v1076_v23 = vpop.f32.mrb[1].mxu1 }
 0x11c   : > { %v949_v24 = vpop.f32.mrb[2].mxu0  ;;  %v1077_v25 = vpop.f32.mrb[2].mxu1 }
 0x11d   : > { %v1467_v26 = vmax.f32 %v1403_v20, 0.0  ;;  %v1499_v27 = vmax.f32 %v1435_v21, 0.0  ;;  %v1404_v28 = vadd.f32 %v2194_v17, %v949_v24  ;;  %v1436_v29 = vadd.f32 %v2194_v17, %v1077_v25  ;;  %v951_v30 = vpop.f32.mrb[3].mxu0  ;;  %v1079_v31 = vpop.f32.mrb[3].mxu1 }
 0x11f   : > { %1531 = vst [vmem:[%s2203_s30] sm:$0xff] %v1467_v26  ;;  %1563 = vst [vmem:[%s2203_s30 + $0x100] sm:$0xff] %v1499_v27  ;;  %v1468_v32 = vmax.f32 %v1404_v28, 0.0  ;;  %v1500_v33 = vmax.f32 %v1436_v29, 0.0 }
 0x121   : > { %1532 = vst [vmem:[%s2203_s30 + $0x8] sm:$0xff] %v1468_v32  ;;  %1564 = vst [vmem:[%s2203_s30 + $0x108] sm:$0xff] %v1500_v33 }
 0x122   : > { %v954_v34 = vpop.f32.mrb[4].mxu0  ;;  %v1082_v35 = vpop.f32.mrb[4].mxu1 }
 0x123   : > { %v1405_v36 = vadd.f32 %v2194_v17, %v954_v34  ;;  %v1437_v37 = vadd.f32 %v2194_v17, %v1082_v35  ;;  %v956_v38 = vpop.f32.mrb[5].mxu0  ;;  %v1084_v39 = vpop.f32.mrb[5].mxu1 }
 0x124   : > { %v957_v40 = vpop.f32.mrb[6].mxu0  ;;  %v1085_v41 = vpop.f32.mrb[6].mxu1 }
 0x125   : > { %v1469_v42 = vmax.f32 %v1405_v36, 0.0  ;;  %v1501_v43 = vmax.f32 %v1437_v37, 0.0  ;;  %v1406_v44 = vadd.f32 %v2194_v17, %v957_v40  ;;  %v1438_v45 = vadd.f32 %v2194_v17, %v1085_v41  ;;  %v959_v46 = vpop.f32.mrb[7].mxu0  ;;  %v1087_v47 = vpop.f32.mrb[7].mxu1 }
 0x127   : > { %1533 = vst [vmem:[%s2203_s30 + $0x10] sm:$0xff] %v1469_v42  ;;  %1565 = vst [vmem:[%s2203_s30 + $0x110] sm:$0xff] %v1501_v43  ;;  %v1470_v48 = vmax.f32 %v1406_v44, 0.0  ;;  %v1502_v49 = vmax.f32 %v1438_v45, 0.0 }
 0x129   : > { %1534 = vst [vmem:[%s2203_s30 + $0x18] sm:$0xff] %v1470_v48  ;;  %1566 = vst [vmem:[%s2203_s30 + $0x118] sm:$0xff] %v1502_v49 }
 0x12a   : > { %v962_v50 = vpop.f32.mrb[8].mxu0  ;;  %v1090_v51 = vpop.f32.mrb[8].mxu1 }
 0x12b   : > { %v1407_v52 = vadd.f32 %v2194_v17, %v962_v50  ;;  %v1439_v53 = vadd.f32 %v2194_v17, %v1090_v51  ;;  %v964_v54 = vpop.f32.mrb[9].mxu0  ;;  %v1092_v55 = vpop.f32.mrb[9].mxu1 }
 0x12c   : > { %v965_v56 = vpop.f32.mrb[10].mxu0  ;;  %v1093_v57 = vpop.f32.mrb[10].mxu1 }
 0x12d   : > { %v1471_v58 = vmax.f32 %v1407_v52, 0.0  ;;  %v1503_v59 = vmax.f32 %v1439_v53, 0.0  ;;  %v1408_v60 = vadd.f32 %v2194_v17, %v965_v56  ;;  %v1440_v61 = vadd.f32 %v2194_v17, %v1093_v57  ;;  %v967_v62 = vpop.f32.mrb[11].mxu0  ;;  %v1095_v63 = vpop.f32.mrb[11].mxu1 }
 0x12f   : > { %1535 = vst [vmem:[%s2203_s30 + $0x20] sm:$0xff] %v1471_v58  ;;  %1567 = vst [vmem:[%s2203_s30 + $0x120] sm:$0xff] %v1503_v59  ;;  %v1472_v0 = vmax.f32 %v1408_v60, 0.0  ;;  %v1504_v1 = vmax.f32 %v1440_v61, 0.0 }
 0x131   : > { %1536 = vst [vmem:[%s2203_s30 + $0x28] sm:$0xff] %v1472_v0  ;;  %1568 = vst [vmem:[%s2203_s30 + $0x128] sm:$0xff] %v1504_v1 }
 0x132   : > { %v970_v2 = vpop.f32.mrb[12].mxu0  ;;  %v1098_v3 = vpop.f32.mrb[12].mxu1 }
 0x133   : > { %v1409_v4 = vadd.f32 %v2194_v17, %v970_v2  ;;  %v1441_v5 = vadd.f32 %v2194_v17, %v1098_v3  ;;  %v972_v6 = vpop.f32.mrb[13].mxu0  ;;  %v1100_v7 = vpop.f32.mrb[13].mxu1 }
 0x134   : > { %v973_v8 = vpop.f32.mrb[14].mxu0  ;;  %v1101_v9 = vpop.f32.mrb[14].mxu1 }
 0x135   : > { %v1473_v10 = vmax.f32 %v1409_v4, 0.0  ;;  %v1505_v11 = vmax.f32 %v1441_v5, 0.0  ;;  %v1410_v12 = vadd.f32 %v2194_v17, %v973_v8  ;;  %v1442_v13 = vadd.f32 %v2194_v17, %v1101_v9  ;;  %v975_v14 = vpop.f32.mrb[15].mxu0  ;;  %v1103_v15 = vpop.f32.mrb[15].mxu1 }
 0x137   : > { %1537 = vst [vmem:[%s2203_s30 + $0x30] sm:$0xff] %v1473_v10  ;;  %1569 = vst [vmem:[%s2203_s30 + $0x130] sm:$0xff] %v1505_v11  ;;  %v1474_v16 = vmax.f32 %v1410_v12, 0.0  ;;  %v1506_v18 = vmax.f32 %v1442_v13, 0.0 }
 0x139   : > { %1538 = vst [vmem:[%s2203_s30 + $0x38] sm:$0xff] %v1474_v16  ;;  %1570 = vst [vmem:[%s2203_s30 + $0x138] sm:$0xff] %v1506_v18 }
 0x13a   : > { %v978_v19 = vpop.f32.mrb[16].mxu0  ;;  %v1106_v20 = vpop.f32.mrb[16].mxu1 }
 0x13b   : > { %v1411_v21 = vadd.f32 %v2194_v17, %v978_v19  ;;  %v1443_v22 = vadd.f32 %v2194_v17, %v1106_v20  ;;  %v980_v23 = vpop.f32.mrb[17].mxu0  ;;  %v1108_v24 = vpop.f32.mrb[17].mxu1 }
 0x13c   : > { %v981_v25 = vpop.f32.mrb[18].mxu0  ;;  %v1109_v26 = vpop.f32.mrb[18].mxu1 }
 0x13d   : > { %v1475_v27 = vmax.f32 %v1411_v21, 0.0  ;;  %v1507_v28 = vmax.f32 %v1443_v22, 0.0  ;;  %v1412_v29 = vadd.f32 %v2194_v17, %v981_v25  ;;  %v1444_v30 = vadd.f32 %v2194_v17, %v1109_v26  ;;  %v983_v31 = vpop.f32.mrb[19].mxu0  ;;  %v1111_v32 = vpop.f32.mrb[19].mxu1 }
 0x13f   : > { %1539 = vst [vmem:[%s2203_s30 + $0x40] sm:$0xff] %v1475_v27  ;;  %1571 = vst [vmem:[%s2203_s30 + $0x140] sm:$0xff] %v1507_v28  ;;  %v1476_v33 = vmax.f32 %v1412_v29, 0.0  ;;  %v1508_v34 = vmax.f32 %v1444_v30, 0.0 }
 0x141   : > { %1540 = vst [vmem:[%s2203_s30 + $0x48] sm:$0xff] %v1476_v33  ;;  %1572 = vst [vmem:[%s2203_s30 + $0x148] sm:$0xff] %v1508_v34 }
 0x142   : > { %v986_v35 = vpop.f32.mrb[20].mxu0  ;;  %v1114_v36 = vpop.f32.mrb[20].mxu1 }
 0x143   : > { %v1413_v37 = vadd.f32 %v2194_v17, %v986_v35  ;;  %v1445_v38 = vadd.f32 %v2194_v17, %v1114_v36  ;;  %v988_v39 = vpop.f32.mrb[21].mxu0  ;;  %v1116_v40 = vpop.f32.mrb[21].mxu1 }
 0x144   : > { %v989_v41 = vpop.f32.mrb[22].mxu0  ;;  %v1117_v42 = vpop.f32.mrb[22].mxu1 }
 0x145   : > { %v1477_v43 = vmax.f32 %v1413_v37, 0.0  ;;  %v1509_v44 = vmax.f32 %v1445_v38, 0.0  ;;  %v1414_v45 = vadd.f32 %v2194_v17, %v989_v41  ;;  %v1446_v46 = vadd.f32 %v2194_v17, %v1117_v42  ;;  %v991_v47 = vpop.f32.mrb[23].mxu0  ;;  %v1119_v48 = vpop.f32.mrb[23].mxu1 }
 0x147   : > { %1541 = vst [vmem:[%s2203_s30 + $0x50] sm:$0xff] %v1477_v43  ;;  %1573 = vst [vmem:[%s2203_s30 + $0x150] sm:$0xff] %v1509_v44  ;;  %v1478_v49 = vmax.f32 %v1414_v45, 0.0  ;;  %v1510_v50 = vmax.f32 %v1446_v46, 0.0 }
 0x149   : > { %1542 = vst [vmem:[%s2203_s30 + $0x58] sm:$0xff] %v1478_v49  ;;  %1574 = vst [vmem:[%s2203_s30 + $0x158] sm:$0xff] %v1510_v50 }
 0x14a   : > { %v994_v51 = vpop.f32.mrb[24].mxu0  ;;  %v1122_v52 = vpop.f32.mrb[24].mxu1 }
 0x14b   : > { %v1415_v53 = vadd.f32 %v2194_v17, %v994_v51  ;;  %v1447_v54 = vadd.f32 %v2194_v17, %v1122_v52  ;;  %v996_v55 = vpop.f32.mrb[25].mxu0  ;;  %v1124_v56 = vpop.f32.mrb[25].mxu1 }
 0x14c   : > { %v997_v57 = vpop.f32.mrb[26].mxu0  ;;  %v1125_v58 = vpop.f32.mrb[26].mxu1 }
 0x14d   : > { %v1479_v59 = vmax.f32 %v1415_v53, 0.0  ;;  %v1511_v60 = vmax.f32 %v1447_v54, 0.0  ;;  %v1416_v61 = vadd.f32 %v2194_v17, %v997_v57  ;;  %v1448_v62 = vadd.f32 %v2194_v17, %v1125_v58  ;;  %v999_v63 = vpop.f32.mrb[27].mxu0  ;;  %v1127_v0 = vpop.f32.mrb[27].mxu1 }
 0x14f   : > { %1543 = vst [vmem:[%s2203_s30 + $0x60] sm:$0xff] %v1479_v59  ;;  %1575 = vst [vmem:[%s2203_s30 + $0x160] sm:$0xff] %v1511_v60  ;;  %v1480_v1 = vmax.f32 %v1416_v61, 0.0  ;;  %v1512_v2 = vmax.f32 %v1448_v62, 0.0 }
 0x151   : > { %1544 = vst [vmem:[%s2203_s30 + $0x68] sm:$0xff] %v1480_v1  ;;  %1576 = vst [vmem:[%s2203_s30 + $0x168] sm:$0xff] %v1512_v2 }
 0x152   : > { %v1002_v3 = vpop.f32.mrb[28].mxu0  ;;  %v1130_v4 = vpop.f32.mrb[28].mxu1 }
 0x153   : > { %v1417_v5 = vadd.f32 %v2194_v17, %v1002_v3  ;;  %v1449_v6 = vadd.f32 %v2194_v17, %v1130_v4  ;;  %v1004_v7 = vpop.f32.mrb[29].mxu0  ;;  %v1132_v8 = vpop.f32.mrb[29].mxu1 }
 0x154   : > { %v1005_v9 = vpop.f32.mrb[30].mxu0  ;;  %v1133_v10 = vpop.f32.mrb[30].mxu1 }
 0x155   : > { %v1481_v11 = vmax.f32 %v1417_v5, 0.0  ;;  %v1513_v12 = vmax.f32 %v1449_v6, 0.0  ;;  %v1418_v13 = vadd.f32 %v2194_v17, %v1005_v9  ;;  %v1450_v14 = vadd.f32 %v2194_v17, %v1133_v10  ;;  %v1007_v15 = vpop.f32.mrb[31].mxu0  ;;  %v1135_v16 = vpop.f32.mrb[31].mxu1 }
 0x157   : > { %1545 = vst [vmem:[%s2203_s30 + $0x70] sm:$0xff] %v1481_v11  ;;  %1577 = vst [vmem:[%s2203_s30 + $0x170] sm:$0xff] %v1513_v12  ;;  %v1482_v18 = vmax.f32 %v1418_v13, 0.0  ;;  %v1514_v19 = vmax.f32 %v1450_v14, 0.0 }
 0x159   : > { %1546 = vst [vmem:[%s2203_s30 + $0x78] sm:$0xff] %v1482_v18  ;;  %1578 = vst [vmem:[%s2203_s30 + $0x178] sm:$0xff] %v1514_v19 }
 0x15a   : > { %v1010_v20 = vpop.f32.mrb[32].mxu0  ;;  %v1138_v21 = vpop.f32.mrb[32].mxu1 }
 0x15b   : > { %v1419_v22 = vadd.f32 %v2194_v17, %v1010_v20  ;;  %v1451_v23 = vadd.f32 %v2194_v17, %v1138_v21  ;;  %v1012_v24 = vpop.f32.mrb[33].mxu0  ;;  %v1140_v25 = vpop.f32.mrb[33].mxu1 }
 0x15c   : > { %v1013_v26 = vpop.f32.mrb[34].mxu0  ;;  %v1141_v27 = vpop.f32.mrb[34].mxu1 }
 0x15d   : > { %v1483_v28 = vmax.f32 %v1419_v22, 0.0  ;;  %v1515_v29 = vmax.f32 %v1451_v23, 0.0  ;;  %v1420_v30 = vadd.f32 %v2194_v17, %v1013_v26  ;;  %v1452_v31 = vadd.f32 %v2194_v17, %v1141_v27  ;;  %v1015_v32 = vpop.f32.mrb[35].mxu0  ;;  %v1143_v33 = vpop.f32.mrb[35].mxu1 }
 0x15f   : > { %1547 = vst [vmem:[%s2203_s30 + $0x80] sm:$0xff] %v1483_v28  ;;  %1579 = vst [vmem:[%s2203_s30 + $0x180] sm:$0xff] %v1515_v29  ;;  %v1484_v34 = vmax.f32 %v1420_v30, 0.0  ;;  %v1516_v35 = vmax.f32 %v1452_v31, 0.0 }
 0x161   : > { %1548 = vst [vmem:[%s2203_s30 + $0x88] sm:$0xff] %v1484_v34  ;;  %1580 = vst [vmem:[%s2203_s30 + $0x188] sm:$0xff] %v1516_v35 }
 0x162   : > { %v1018_v36 = vpop.f32.mrb[36].mxu0  ;;  %v1146_v37 = vpop.f32.mrb[36].mxu1 }
 0x163   : > { %v1421_v38 = vadd.f32 %v2194_v17, %v1018_v36  ;;  %v1453_v39 = vadd.f32 %v2194_v17, %v1146_v37  ;;  %v1020_v40 = vpop.f32.mrb[37].mxu0  ;;  %v1148_v41 = vpop.f32.mrb[37].mxu1 }
 0x164   : > { %v1021_v42 = vpop.f32.mrb[38].mxu0  ;;  %v1149_v43 = vpop.f32.mrb[38].mxu1 }
 0x165   : > { %v1485_v44 = vmax.f32 %v1421_v38, 0.0  ;;  %v1517_v45 = vmax.f32 %v1453_v39, 0.0  ;;  %v1422_v46 = vadd.f32 %v2194_v17, %v1021_v42  ;;  %v1454_v47 = vadd.f32 %v2194_v17, %v1149_v43  ;;  %v1023_v48 = vpop.f32.mrb[39].mxu0  ;;  %v1151_v49 = vpop.f32.mrb[39].mxu1 }
 0x167   : > { %1549 = vst [vmem:[%s2203_s30 + $0x90] sm:$0xff] %v1485_v44  ;;  %1581 = vst [vmem:[%s2203_s30 + $0x190] sm:$0xff] %v1517_v45  ;;  %v1486_v50 = vmax.f32 %v1422_v46, 0.0  ;;  %v1518_v51 = vmax.f32 %v1454_v47, 0.0 }
 0x169   : > { %1550 = vst [vmem:[%s2203_s30 + $0x98] sm:$0xff] %v1486_v50  ;;  %1582 = vst [vmem:[%s2203_s30 + $0x198] sm:$0xff] %v1518_v51 }
 0x16a   : > { %v1026_v52 = vpop.f32.mrb[40].mxu0  ;;  %v1154_v53 = vpop.f32.mrb[40].mxu1 }
 0x16b   : > { %v1423_v54 = vadd.f32 %v2194_v17, %v1026_v52  ;;  %v1455_v55 = vadd.f32 %v2194_v17, %v1154_v53  ;;  %v1028_v56 = vpop.f32.mrb[41].mxu0  ;;  %v1156_v57 = vpop.f32.mrb[41].mxu1 }
 0x16c   : > { %v1029_v58 = vpop.f32.mrb[42].mxu0  ;;  %v1157_v59 = vpop.f32.mrb[42].mxu1 }
 0x16d   : > { %v1487_v60 = vmax.f32 %v1423_v54, 0.0  ;;  %v1519_v61 = vmax.f32 %v1455_v55, 0.0  ;;  %v1424_v62 = vadd.f32 %v2194_v17, %v1029_v58  ;;  %v1456_v63 = vadd.f32 %v2194_v17, %v1157_v59  ;;  %v1031_v0 = vpop.f32.mrb[43].mxu0  ;;  %v1159_v1 = vpop.f32.mrb[43].mxu1 }
 0x16f   : > { %1551 = vst [vmem:[%s2203_s30 + $0xa0] sm:$0xff] %v1487_v60  ;;  %1583 = vst [vmem:[%s2203_s30 + $0x1a0] sm:$0xff] %v1519_v61  ;;  %v1488_v2 = vmax.f32 %v1424_v62, 0.0  ;;  %v1520_v3 = vmax.f32 %v1456_v63, 0.0 }
 0x171   : > { %1552 = vst [vmem:[%s2203_s30 + $0xa8] sm:$0xff] %v1488_v2  ;;  %1584 = vst [vmem:[%s2203_s30 + $0x1a8] sm:$0xff] %v1520_v3 }
 0x172   : > { %v1034_v4 = vpop.f32.mrb[44].mxu0  ;;  %v1162_v5 = vpop.f32.mrb[44].mxu1 }
 0x173   : > { %v1425_v6 = vadd.f32 %v2194_v17, %v1034_v4  ;;  %v1457_v7 = vadd.f32 %v2194_v17, %v1162_v5  ;;  %v1036_v8 = vpop.f32.mrb[45].mxu0  ;;  %v1164_v9 = vpop.f32.mrb[45].mxu1 }
 0x174   : > { %v1037_v10 = vpop.f32.mrb[46].mxu0  ;;  %v1165_v11 = vpop.f32.mrb[46].mxu1 }
 0x175   : > { %v1489_v12 = vmax.f32 %v1425_v6, 0.0  ;;  %v1521_v13 = vmax.f32 %v1457_v7, 0.0  ;;  %v1426_v14 = vadd.f32 %v2194_v17, %v1037_v10  ;;  %v1458_v15 = vadd.f32 %v2194_v17, %v1165_v11  ;;  %v1039_v16 = vpop.f32.mrb[47].mxu0  ;;  %v1167_v18 = vpop.f32.mrb[47].mxu1 }
 0x177   : > { %1553 = vst [vmem:[%s2203_s30 + $0xb0] sm:$0xff] %v1489_v12  ;;  %1585 = vst [vmem:[%s2203_s30 + $0x1b0] sm:$0xff] %v1521_v13  ;;  %v1490_v19 = vmax.f32 %v1426_v14, 0.0  ;;  %v1522_v20 = vmax.f32 %v1458_v15, 0.0 }
 0x179   : > { %1554 = vst [vmem:[%s2203_s30 + $0xb8] sm:$0xff] %v1490_v19  ;;  %1586 = vst [vmem:[%s2203_s30 + $0x1b8] sm:$0xff] %v1522_v20 }
 0x17a   : > { %v1042_v21 = vpop.f32.mrb[48].mxu0  ;;  %v1170_v22 = vpop.f32.mrb[48].mxu1 }
 0x17b   : > { %v1427_v23 = vadd.f32 %v2194_v17, %v1042_v21  ;;  %v1459_v24 = vadd.f32 %v2194_v17, %v1170_v22  ;;  %v1044_v25 = vpop.f32.mrb[49].mxu0  ;;  %v1172_v26 = vpop.f32.mrb[49].mxu1 }
 0x17c   : > { %v1045_v27 = vpop.f32.mrb[50].mxu0  ;;  %v1173_v28 = vpop.f32.mrb[50].mxu1 }
 0x17d   : > { %v1491_v29 = vmax.f32 %v1427_v23, 0.0  ;;  %v1523_v30 = vmax.f32 %v1459_v24, 0.0  ;;  %v1428_v31 = vadd.f32 %v2194_v17, %v1045_v27  ;;  %v1460_v32 = vadd.f32 %v2194_v17, %v1173_v28  ;;  %v1047_v33 = vpop.f32.mrb[51].mxu0  ;;  %v1175_v34 = vpop.f32.mrb[51].mxu1 }
 0x17f   : > { %1555 = vst [vmem:[%s2203_s30 + $0xc0] sm:$0xff] %v1491_v29  ;;  %1587 = vst [vmem:[%s2203_s30 + $0x1c0] sm:$0xff] %v1523_v30  ;;  %v1492_v35 = vmax.f32 %v1428_v31, 0.0  ;;  %v1524_v36 = vmax.f32 %v1460_v32, 0.0 }
 0x181   : > { %1556 = vst [vmem:[%s2203_s30 + $0xc8] sm:$0xff] %v1492_v35  ;;  %1588 = vst [vmem:[%s2203_s30 + $0x1c8] sm:$0xff] %v1524_v36 }
 0x182   : > { %v1050_v37 = vpop.f32.mrb[52].mxu0  ;;  %v1178_v38 = vpop.f32.mrb[52].mxu1 }
 0x183   : > { %v1429_v39 = vadd.f32 %v2194_v17, %v1050_v37  ;;  %v1461_v40 = vadd.f32 %v2194_v17, %v1178_v38  ;;  %v1052_v41 = vpop.f32.mrb[53].mxu0  ;;  %v1180_v42 = vpop.f32.mrb[53].mxu1 }
 0x184   : > { %v1053_v43 = vpop.f32.mrb[54].mxu0  ;;  %v1181_v44 = vpop.f32.mrb[54].mxu1 }
 0x185   : > { %v1493_v45 = vmax.f32 %v1429_v39, 0.0  ;;  %v1525_v46 = vmax.f32 %v1461_v40, 0.0  ;;  %v1430_v47 = vadd.f32 %v2194_v17, %v1053_v43  ;;  %v1462_v48 = vadd.f32 %v2194_v17, %v1181_v44  ;;  %v1055_v49 = vpop.f32.mrb[55].mxu0  ;;  %v1183_v50 = vpop.f32.mrb[55].mxu1 }
 0x187   : > { %1557 = vst [vmem:[%s2203_s30 + $0xd0] sm:$0xff] %v1493_v45  ;;  %1589 = vst [vmem:[%s2203_s30 + $0x1d0] sm:$0xff] %v1525_v46  ;;  %v1494_v51 = vmax.f32 %v1430_v47, 0.0  ;;  %v1526_v52 = vmax.f32 %v1462_v48, 0.0 }
 0x189   : > { %1558 = vst [vmem:[%s2203_s30 + $0xd8] sm:$0xff] %v1494_v51  ;;  %1590 = vst [vmem:[%s2203_s30 + $0x1d8] sm:$0xff] %v1526_v52 }
 0x18a   : > { %v1058_v53 = vpop.f32.mrb[56].mxu0  ;;  %v1186_v54 = vpop.f32.mrb[56].mxu1 }
 0x18b   : > { %v1431_v55 = vadd.f32 %v2194_v17, %v1058_v53  ;;  %v1463_v56 = vadd.f32 %v2194_v17, %v1186_v54  ;;  %v1060_v57 = vpop.f32.mrb[57].mxu0  ;;  %v1188_v58 = vpop.f32.mrb[57].mxu1 }
 0x18c   : > { %v1061_v59 = vpop.f32.mrb[58].mxu0  ;;  %v1189_v60 = vpop.f32.mrb[58].mxu1 }
 0x18d   : > { %v1495_v61 = vmax.f32 %v1431_v55, 0.0  ;;  %v1527_v62 = vmax.f32 %v1463_v56, 0.0  ;;  %v1432_v63 = vadd.f32 %v2194_v17, %v1061_v59  ;;  %v1464_v0 = vadd.f32 %v2194_v17, %v1189_v60  ;;  %v1063_v1 = vpop.f32.mrb[59].mxu0  ;;  %v1191_v2 = vpop.f32.mrb[59].mxu1 }
 0x18f   : > { %1559 = vst [vmem:[%s2203_s30 + $0xe0] sm:$0xff] %v1495_v61  ;;  %1591 = vst [vmem:[%s2203_s30 + $0x1e0] sm:$0xff] %v1527_v62  ;;  %v1496_v3 = vmax.f32 %v1432_v63, 0.0  ;;  %v1528_v4 = vmax.f32 %v1464_v0, 0.0 }
 0x191   : > { %1560 = vst [vmem:[%s2203_s30 + $0xe8] sm:$0xff] %v1496_v3  ;;  %1592 = vst [vmem:[%s2203_s30 + $0x1e8] sm:$0xff] %v1528_v4 }
 0x192   : > { %v1066_v5 = vpop.f32.mrb[60].mxu0  ;;  %v1194_v6 = vpop.f32.mrb[60].mxu1 }
 0x193   : > { %v1433_v7 = vadd.f32 %v2194_v17, %v1066_v5  ;;  %v1465_v8 = vadd.f32 %v2194_v17, %v1194_v6  ;;  %v1068_v9 = vpop.f32.mrb[61].mxu0  ;;  %v1196_v10 = vpop.f32.mrb[61].mxu1 }
 0x194   : > { %v1069_v11 = vpop.f32.mrb[62].mxu0  ;;  %v1197_v12 = vpop.f32.mrb[62].mxu1 }
 0x195   : > { %v1497_v13 = vmax.f32 %v1433_v7, 0.0  ;;  %v1529_v14 = vmax.f32 %v1465_v8, 0.0  ;;  %v1434_v15 = vadd.f32 %v2194_v17, %v1069_v11  ;;  %v1466_v16 = vadd.f32 %v2194_v17, %v1197_v12  ;;  %v1071_v18 = vpop.f32.mrb[63].mxu0  ;;  %v1199_v19 = vpop.f32.mrb[63].mxu1 }
 0x197   : > { %1561 = vst [vmem:[%s2203_s30 + $0xf0] sm:$0xff] %v1497_v13  ;;  %1593 = vst [vmem:[%s2203_s30 + $0x1f0] sm:$0xff] %v1529_v14  ;;  %v1498_v20 = vmax.f32 %v1434_v15, 0.0  ;;  %v1530_v21 = vmax.f32 %v1466_v16, 0.0 }
 0x199   : > { %1562 = vst [vmem:[%s2203_s30 + $0xf8] sm:$0xff] %v1498_v20  ;;  %1594 = vst [vmem:[%s2203_s30 + $0x1f8] sm:$0xff] %v1530_v21 }
 0x19a PF: > { %s13_s14 = sadd.s32 1, %s1996_s14   ;;  %s2344_s12 = smov %s1992_s13 }
 0x19b   : > { %p10_p5 = scmp.ge.s32.totalorder %s13_s14, 6   ;;  %s2345_s13 = smov %s2347_s15 }
 0x19d   :  { %12 = sbr.rel (!%p10_p5) target bundleno = 2 (0x2), region = 76 }

</bundles_post_ra>
